<compile_context>
chip_gen: v7x
topology: tpu7x:2x2x1
jax: 0.10.0
libtpu: 0.0.40
codegen_flags: <defaults>
</compile_context>

<pallas_src>
import functools

import jax
import jax.numpy as jnp
from jax import lax
from jax.experimental import pallas as pl
from jax.experimental.pallas import tpu as pltpu

BN_EPS = 1e-3  # matches batch_norm(...) -> nn.BatchNorm2d(..., eps=0.001)


def _bn_relu_conv3x3_kernel(x_ref, wb_ref, scale_ref, shift_ref, o_ref, pad_ref,
                            *, apply_bn_relu):
    """Per-image: [affine BN + ReLU]? -> 3x3 conv (stride 1, pad 1).

    x_ref:     (1, H, W*Cin)   activation block (lane-dense, C fastest in a row)
    wb_ref:    (3, W*Cin, W*Cout) banded conv weights (bf16), one slab per dy
    scale_ref: (1, W*Cin)      BN scale tiled over W
    shift_ref: (1, W*Cin)      BN shift tiled over W
    o_ref:     (1, H, W*Cout)  output block (lane-dense)
    pad_ref:   (H+2, W*Cin)    VMEM scratch, vertical zero halo only
    """
    _, H, wc_in = x_ref.shape
    wc_out = o_ref.shape[2]

    h = x_ref[0].astype(jnp.float32)                       # (H, W*Cin)
    if apply_bn_relu:
        h = jnp.maximum(h * scale_ref[...] + shift_ref[...], 0.0)

    # Vertical zero halo (horizontal padding is folded into the banded weights).
    # Each scratch element is written exactly once per grid step.
    zero_row = jnp.zeros((1, wc_in), jnp.float32)
    pad_ref[0:1, :] = zero_row
    pad_ref[H + 1:H + 2, :] = zero_row
    pad_ref[1:H + 1, :] = h

    # 3 wide matmuls (K = W*Cin), bf16 operands, f32 accumulation.
    acc = jnp.zeros((H, wc_out), jnp.float32)
    for dy in range(3):
        a = pad_ref[dy:dy + H, :].astype(jnp.bfloat16)     # sublane row offset only
        acc += jnp.dot(a, wb_ref[dy], preferred_element_type=jnp.float32)

    o_ref[0] = acc.astype(o_ref.dtype)


def _band_conv_weights(w_hwio, W):
    """(3, 3, Cin, Cout) -> (3, W*Cin, W*Cout) block-banded matrices.

    Wb[dy][p*Cin + c, w*Cout + o] = w_hwio[dy, dx, c, o]  with p = w + dx - 1.
    Out-of-range taps (p < 0 or p >= W) are dropped, which is exactly the
    zero-padding contribution in the horizontal direction.
    """
    kh, kw, cin, cout = w_hwio.shape
    wb = jnp.zeros((kh, W * cin, W * cout), jnp.float32)
    for dx in range(kw):
        for w in range(W):
            p = w + dx - 1
            if 0 <= p < W:
                wb = wb.at[:, p * cin:(p + 1) * cin,
                           w * cout:(w + 1) * cout].set(w_hwio[:, dx])
    return wb


def _bn_relu_conv3x3(x_nhc, wb_bf16, scale, shift, cin, cout, *, apply_bn_relu):
    """x_nhc: (N, H, W*cin) f32 -> (N, H, W*cout) f32."""
    N, H, wc_in = x_nhc.shape
    W = wc_in // cin
    wc_out = W * cout

    kernel = functools.partial(_bn_relu_conv3x3_kernel,
                               apply_bn_relu=apply_bn_relu)
    return pl.pallas_call(
        kernel,
        out_shape=jax.ShapeDtypeStruct((N, H, wc_out), jnp.float32),
        grid_spec=pltpu.PrefetchScalarGridSpec(
            num_scalar_prefetch=0,
            grid=(N,),
            in_specs=[
                pl.BlockSpec((1, H, wc_in), lambda n: (n, 0, 0)),
                pl.BlockSpec((3, wc_in, wc_out), lambda n: (0, 0, 0)),
                pl.BlockSpec((1, wc_in), lambda n: (0, 0)),
                pl.BlockSpec((1, wc_in), lambda n: (0, 0)),
            ],
            out_specs=pl.BlockSpec((1, H, wc_out), lambda n: (n, 0, 0)),
            scratch_shapes=[pltpu.VMEM((H + 2, wc_in), jnp.float32)],
        ),
        compiler_params=pltpu.CompilerParams(
            dimension_semantics=("parallel",)),   # megacore on v7x, no-op on v5e/v6e
    )(x_nhc, wb_bf16, scale, shift)


def basic_block_sub(x_nhwc, w1_hwio, w2_hwio, g1, b1, g2, b2, *, noactivation=False):
    """x_nhwc: (N, H, W, Cin) float32; w*_hwio: (3, 3, Cin/Cout, Cout)."""
    N, H, W, cin = x_nhwc.shape
    cout = w1_hwio.shape[-1]
    x_nhwc = x_nhwc.astype(jnp.float32)

    # Banded conv weights, bf16 (MXU-native narrow format; f32 accumulation in-kernel).
    wb1 = _band_conv_weights(w1_hwio.astype(jnp.float32), W).astype(jnp.bfloat16)
    wb2 = _band_conv_weights(w2_hwio.astype(jnp.float32), W).astype(jnp.bfloat16)

    # ---- BN1 batch statistics (hoisted; cheap XLA reduction over N*H*W) ----
    if not noactivation:
        xf = x_nhwc.reshape(-1, cin)
        mu1 = jnp.mean(xf, axis=0)
        var1 = jnp.mean((xf - mu1) ** 2, axis=0)          # biased, as in BN forward
        s1 = g1.astype(jnp.float32) * lax.rsqrt(var1 + BN_EPS)
        sh1 = b1.astype(jnp.float32) - mu1 * s1
    else:
        s1 = jnp.ones((cin,), jnp.float32)
        sh1 = jnp.zeros((cin,), jnp.float32)
    scale1 = jnp.tile(s1, W).reshape(1, W * cin)
    shift1 = jnp.tile(sh1, W).reshape(1, W * cin)

    # ---- kernel 1: [BN1 + ReLU]? -> conv1 (stride 1) ------------------------
    # (N, H, W, Cin) -> (N, H, W*Cin) is a free HBM-side reshape (contiguous).
    x_nhc = x_nhwc.reshape(N, H, W * cin)
    y1 = _bn_relu_conv3x3(x_nhc, wb1, scale1, shift1, cin, cout,
                          apply_bn_relu=not noactivation)   # (N, H, W*cout), f32

    # ---- BN2 batch statistics on conv1 output (hoisted) ---------------------
    # Note: for v5e (HBM-bound) y1 could round-trip as bf16; kept f32 here.
    y1f = y1.reshape(-1, cout)
    mu2 = jnp.mean(y1f, axis=0)
    var2 = jnp.mean((y1f - mu2) ** 2, axis=0)
    s2 = g2.astype(jnp.float32) * lax.rsqrt(var2 + BN_EPS)
    sh2 = b2.astype(jnp.float32) - mu2 * s2
    scale2 = jnp.tile(s2, W).reshape(1, W * cout)
    shift2 = jnp.tile(sh2, W).reshape(1, W * cout)

    # ---- kernel 2: BN2 + ReLU -> conv2 --------------------------------------
    y2 = _bn_relu_conv3x3(y1, wb2, scale2, shift2, cout, cout,
                          apply_bn_relu=True)               # (N, H, W*cout)

    return y2.reshape(N, H, W, cout)


def _reference_forward(x_nhwc, w1_hwio, w2_hwio, g1, b1, g2, b2, *, noactivation=False):
    """Pure-JAX (XLA, f32 HIGHEST) reference with the module's semantics."""
    def bn(h, g, b):
        mu = jnp.mean(h, axis=(0, 1, 2), keepdims=True)
        var = jnp.mean((h - mu) ** 2, axis=(0, 1, 2), keepdims=True)
        return (h - mu) * lax.rsqrt(var + BN_EPS) * g.reshape(1, 1, 1, -1) + b.reshape(1, 1, 1, -1)

    def conv(h, w):
        return lax.conv_general_dilated(
            h, w, window_strides=(1, 1), padding="SAME",
            dimension_numbers=("NHWC", "HWIO", "NHWC"),
            precision=lax.Precision.HIGHEST)

    h = x_nhwc
    if not noactivation:
        h = jnp.maximum(bn(h, g1, b1), 0.0)
    h = conv(h, w1_hwio)
    h = jnp.maximum(bn(h, g2, b2), 0.0)
    h = conv(h, w2_hwio)
    return h


if __name__ == "__main__":
    # Module config: BasicBlockSub(inplanes=8, planes=16, stride=1, noactivation=False)
    N, H, W = 2, 16, 16
    inplanes, planes = 8, 16

    key = jax.random.PRNGKey(0)
    kx, kw1, kw2, kg1, kb1, kg2, kb2 = jax.random.split(key, 7)

    # PyTorch input would be NCHW (2, 8, 16, 16); kernel uses NHWC internally.
    x_nchw = jax.random.normal(kx, (N, inplanes, H, W), dtype=jnp.float32)
    x_nhwc = jnp.transpose(x_nchw, (0, 2, 3, 1))

    # conv3x3 weights (PyTorch OIHW) generated directly in HWIO.
    w1_hwio = 0.2 * jax.random.normal(kw1, (3, 3, inplanes, planes), dtype=jnp.float32)
    w2_hwio = 0.2 * jax.random.normal(kw2, (3, 3, planes, planes), dtype=jnp.float32)

    # BatchNorm affine params (deterministic random to exercise scale/shift math).
    g1 = 1.0 + 0.1 * jax.random.normal(kg1, (inplanes,), dtype=jnp.float32)
    b1 = 0.1 * jax.random.normal(kb1, (inplanes,), dtype=jnp.float32)
    g2 = 1.0 + 0.1 * jax.random.normal(kg2, (planes,), dtype=jnp.float32)
    b2 = 0.1 * jax.random.normal(kb2, (planes,), dtype=jnp.float32)

    fwd = jax.jit(functools.partial(basic_block_sub, noactivation=False))
    out = jax.block_until_ready(fwd(x_nhwc, w1_hwio, w2_hwio, g1, b1, g2, b2))

    ref = _reference_forward(x_nhwc, w1_hwio, w2_hwio, g1, b1, g2, b2, noactivation=False)
    ref = jax.block_until_ready(ref)

    assert out.shape == (N, H, W, planes), out.shape
    # bf16 MXU operands (f32 accumulation) vs. an f32-HIGHEST reference -> loose tol.
    max_err = float(jnp.max(jnp.abs(out - ref)))
    assert jnp.allclose(out, ref, rtol=5e-2, atol=5e-2), max_err

    print("KERNEL_OK")
</pallas_src>

<mosaic_0001>
module attributes {stable_mosaic.version = 11 : i64} {
  func.func @_bn_relu_conv3x3_kernel(%arg0: i32, %arg1: memref<1x16x128xf32, #tpu.memory_space<vmem>>, %arg2: memref<3x128x256xbf16, #tpu.memory_space<vmem>>, %arg3: memref<1x128xf32, #tpu.memory_space<vmem>>, %arg4: memref<1x128xf32, #tpu.memory_space<vmem>>, %arg5: memref<1x16x256xf32, #tpu.memory_space<vmem>>, %arg6: memref<18x128xf32, #tpu.memory_space<vmem>>) attributes {dimension_semantics = [#tpu.dimension_semantics<parallel>], iteration_bounds = array<i64: 2>, scalar_prefetch = 0 : i64, scratch_operands = 1 : i64, tpu.core_type = #tpu.core_type<tc>, window_params = [{transform_indices = @transform_0, window_bounds = array<i64: 1, 16, 128>}, {pipeline_mode = #tpu.pipeline_mode<synchronous>, transform_indices = @transform_1, window_bounds = array<i64: 3, 128, 256>}, {pipeline_mode = #tpu.pipeline_mode<synchronous>, transform_indices = @transform_2, window_bounds = array<i64: 1, 128>}, {pipeline_mode = #tpu.pipeline_mode<synchronous>, transform_indices = @transform_3, window_bounds = array<i64: 1, 128>}, {transform_indices = @transform_4, window_bounds = array<i64: 1, 16, 256>}]} {
    %c0 = arith.constant 0 : index
    %c0_0 = arith.constant 0 : index
    %c0_1 = arith.constant 0 : index
    %0 = vector.load %arg1[%c0, %c0_0, %c0_1] : memref<1x16x128xf32, #tpu.memory_space<vmem>>, vector<1x16x128xf32>
    %1 = vector.shape_cast %0 : vector<1x16x128xf32> to vector<16x128xf32>
    %c0_2 = arith.constant 0 : index
    %c0_3 = arith.constant 0 : index
    %2 = vector.load %arg3[%c0_2, %c0_3] : memref<1x128xf32, #tpu.memory_space<vmem>>, vector<1x128xf32>
    %3 = vector.broadcast %2 : vector<1x128xf32> to vector<16x128xf32>
    %4 = arith.mulf %1, %3 : vector<16x128xf32>
    %c0_4 = arith.constant 0 : index
    %c0_5 = arith.constant 0 : index
    %5 = vector.load %arg4[%c0_4, %c0_5] : memref<1x128xf32, #tpu.memory_space<vmem>>, vector<1x128xf32>
    %6 = vector.broadcast %5 : vector<1x128xf32> to vector<16x128xf32>
    %7 = arith.addf %4, %6 : vector<16x128xf32>
    %cst = arith.constant 0.000000e+00 : f32
    %8 = vector.broadcast %cst : f32 to vector<16x128xf32>
    %9 = arith.maximumf %7, %8 : vector<16x128xf32>
    %cst_6 = arith.constant 0.000000e+00 : f32
    %10 = vector.broadcast %cst_6 : f32 to vector<1x128xf32>
    %c0_7 = arith.constant 0 : index
    %c0_8 = arith.constant 0 : index
    %11 = vector.load %arg6[%c0_7, %c0_8] : memref<18x128xf32, #tpu.memory_space<vmem>>, vector<1x128xf32>
    tpu.vector_store %arg6[%c0_7, %c0_8], %10 {strides = array<i32>} : memref<18x128xf32, #tpu.memory_space<vmem>>, vector<1x128xf32>,
    %c17 = arith.constant 17 : index
    %c0_9 = arith.constant 0 : index
    %12 = vector.load %arg6[%c17, %c0_9] : memref<18x128xf32, #tpu.memory_space<vmem>>, vector<1x128xf32>
    tpu.vector_store %arg6[%c17, %c0_9], %10 {strides = array<i32>} : memref<18x128xf32, #tpu.memory_space<vmem>>, vector<1x128xf32>,
    %c1 = arith.constant 1 : index
    %c0_10 = arith.constant 0 : index
    %13 = vector.load %arg6[%c1, %c0_10] : memref<18x128xf32, #tpu.memory_space<vmem>>, vector<16x128xf32>
    tpu.vector_store %arg6[%c1, %c0_10], %9 {strides = array<i32>} : memref<18x128xf32, #tpu.memory_space<vmem>>, vector<16x128xf32>,
    %cst_11 = arith.constant 0.000000e+00 : f32
    %14 = vector.broadcast %cst_11 : f32 to vector<16x256xf32>
    %c0_12 = arith.constant 0 : index
    %c0_13 = arith.constant 0 : index
    %15 = vector.load %arg6[%c0_12, %c0_13] : memref<18x128xf32, #tpu.memory_space<vmem>>, vector<16x128xf32>
    %16 = arith.truncf %15 : vector<16x128xf32> to vector<16x128xbf16>
    %c0_14 = arith.constant 0 : index
    %c0_15 = arith.constant 0 : index
    %c0_16 = arith.constant 0 : index
    %17 = vector.load %arg2[%c0_14, %c0_15, %c0_16] : memref<3x128x256xbf16, #tpu.memory_space<vmem>>, vector<1x128x256xbf16>
    %18 = vector.shape_cast %17 : vector<1x128x256xbf16> to vector<128x256xbf16>
    %cst_17 = arith.constant dense<0.000000e+00> : vector<16x256xf32>
    %19 = tpu.matmul %16, %18, %cst_17 {dimension_numbers = #tpu.dot_dimension_numbers<[1], [0], [0], [1], [0, 0, 1, 1], [], []>} : vector<16x128xbf16>, vector<128x256xbf16>, vector<16x256xf32> -> vector<16x256xf32>
    %20 = arith.addf %14, %19 : vector<16x256xf32>
    %c1_18 = arith.constant 1 : index
    %c0_19 = arith.constant 0 : index
    %21 = vector.load %arg6[%c1_18, %c0_19] : memref<18x128xf32, #tpu.memory_space<vmem>>, vector<16x128xf32>
    %22 = arith.truncf %21 : vector<16x128xf32> to vector<16x128xbf16>
    %c1_20 = arith.constant 1 : index
    %c0_21 = arith.constant 0 : index
    %c0_22 = arith.constant 0 : index
    %23 = vector.load %arg2[%c1_20, %c0_21, %c0_22] : memref<3x128x256xbf16, #tpu.memory_space<vmem>>, vector<1x128x256xbf16>
    %24 = vector.shape_cast %23 : vector<1x128x256xbf16> to vector<128x256xbf16>
    %cst_23 = arith.constant dense<0.000000e+00> : vector<16x256xf32>
    %25 = tpu.matmul %22, %24, %cst_23 {dimension_numbers = #tpu.dot_dimension_numbers<[1], [0], [0], [1], [0, 0, 1, 1], [], []>} : vector<16x128xbf16>, vector<128x256xbf16>, vector<16x256xf32> -> vector<16x256xf32>
    %26 = arith.addf %20, %25 : vector<16x256xf32>
    %c2 = arith.constant 2 : index
    %c0_24 = arith.constant 0 : index
    %27 = vector.load %arg6[%c2, %c0_24] : memref<18x128xf32, #tpu.memory_space<vmem>>, vector<16x128xf32>
    %28 = arith.truncf %27 : vector<16x128xf32> to vector<16x128xbf16>
    %c2_25 = arith.constant 2 : index
    %c0_26 = arith.constant 0 : index
    %c0_27 = arith.constant 0 : index
    %29 = vector.load %arg2[%c2_25, %c0_26, %c0_27] : memref<3x128x256xbf16, #tpu.memory_space<vmem>>, vector<1x128x256xbf16>
    %30 = vector.shape_cast %29 : vector<1x128x256xbf16> to vector<128x256xbf16>
    %cst_28 = arith.constant dense<0.000000e+00> : vector<16x256xf32>
    %31 = tpu.matmul %28, %30, %cst_28 {dimension_numbers = #tpu.dot_dimension_numbers<[1], [0], [0], [1], [0, 0, 1, 1], [], []>} : vector<16x128xbf16>, vector<128x256xbf16>, vector<16x256xf32> -> vector<16x256xf32>
    %32 = arith.addf %26, %31 : vector<16x256xf32>
    %c0_29 = arith.constant 0 : index
    %c0_30 = arith.constant 0 : index
    %c0_31 = arith.constant 0 : index
    %33 = vector.load %arg5[%c0_29, %c0_30, %c0_31] : memref<1x16x256xf32, #tpu.memory_space<vmem>>, vector<1x16x256xf32>
    %34 = vector.shape_cast %33 : vector<1x16x256xf32> to vector<16x256xf32>
    %35 = vector.shape_cast %32 : vector<16x256xf32> to vector<1x16x256xf32>
    tpu.vector_store %arg5[%c0_29, %c0_30, %c0_31], %35 {strides = array<i32>} : memref<1x16x256xf32, #tpu.memory_space<vmem>>, vector<1x16x256xf32>,
    return
  }
  func.func @transform_0(%arg0: i32) -> (i32, i32, i32) {
    %c0_i32 = arith.constant 0 : i32
    %c0_i32_0 = arith.constant 0 : i32
    %c0_i32_1 = arith.constant 0 : i32
    return %arg0, %c0_i32, %c0_i32_0 : i32, i32, i32
  }
  func.func @transform_1(%arg0: i32) -> (i32, i32, i32) {
    %c0_i32 = arith.constant 0 : i32
    %c0_i32_0 = arith.constant 0 : i32
    %c0_i32_1 = arith.constant 0 : i32
    %c0_i32_2 = arith.constant 0 : i32
    return %c0_i32, %c0_i32_0, %c0_i32_1 : i32, i32, i32
  }
  func.func @transform_2(%arg0: i32) -> (i32, i32) {
    %c0_i32 = arith.constant 0 : i32
    %c0_i32_0 = arith.constant 0 : i32
    %c0_i32_1 = arith.constant 0 : i32
    return %c0_i32, %c0_i32_0 : i32, i32
  }
  func.func @transform_3(%arg0: i32) -> (i32, i32) {
    %c0_i32 = arith.constant 0 : i32
    %c0_i32_0 = arith.constant 0 : i32
    %c0_i32_1 = arith.constant 0 : i32
    return %c0_i32, %c0_i32_0 : i32, i32
  }
  func.func @transform_4(%arg0: i32) -> (i32, i32, i32) {
    %c0_i32 = arith.constant 0 : i32
    %c0_i32_0 = arith.constant 0 : i32
    %c0_i32_1 = arith.constant 0 : i32
    return %arg0, %c0_i32, %c0_i32_0 : i32, i32, i32
  }
}

module attributes {stable_mosaic.version = 11 : i64} {
  func.func @_bn_relu_conv3x3_kernel(%arg0: i32, %arg1: memref<1x16x256xf32, #tpu.memory_space<vmem>>, %arg2: memref<3x256x256xbf16, #tpu.memory_space<vmem>>, %arg3: memref<1x256xf32, #tpu.memory_space<vmem>>, %arg4: memref<1x256xf32, #tpu.memory_space<vmem>>, %arg5: memref<1x16x256xf32, #tpu.memory_space<vmem>>, %arg6: memref<18x256xf32, #tpu.memory_space<vmem>>) attributes {dimension_semantics = [#tpu.dimension_semantics<parallel>], iteration_bounds = array<i64: 2>, scalar_prefetch = 0 : i64, scratch_operands = 1 : i64, tpu.core_type = #tpu.core_type<tc>, window_params = [{transform_indices = @transform_0, window_bounds = array<i64: 1, 16, 256>}, {pipeline_mode = #tpu.pipeline_mode<synchronous>, transform_indices = @transform_1, window_bounds = array<i64: 3, 256, 256>}, {pipeline_mode = #tpu.pipeline_mode<synchronous>, transform_indices = @transform_2, window_bounds = array<i64: 1, 256>}, {pipeline_mode = #tpu.pipeline_mode<synchronous>, transform_indices = @transform_3, window_bounds = array<i64: 1, 256>}, {transform_indices = @transform_4, window_bounds = array<i64: 1, 16, 256>}]} {
    %c0 = arith.constant 0 : index
    %c0_0 = arith.constant 0 : index
    %c0_1 = arith.constant 0 : index
    %0 = vector.load %arg1[%c0, %c0_0, %c0_1] : memref<1x16x256xf32, #tpu.memory_space<vmem>>, vector<1x16x256xf32>
    %1 = vector.shape_cast %0 : vector<1x16x256xf32> to vector<16x256xf32>
    %c0_2 = arith.constant 0 : index
    %c0_3 = arith.constant 0 : index
    %2 = vector.load %arg3[%c0_2, %c0_3] : memref<1x256xf32, #tpu.memory_space<vmem>>, vector<1x256xf32>
    %3 = vector.broadcast %2 : vector<1x256xf32> to vector<16x256xf32>
    %4 = arith.mulf %1, %3 : vector<16x256xf32>
    %c0_4 = arith.constant 0 : index
    %c0_5 = arith.constant 0 : index
    %5 = vector.load %arg4[%c0_4, %c0_5] : memref<1x256xf32, #tpu.memory_space<vmem>>, vector<1x256xf32>
    %6 = vector.broadcast %5 : vector<1x256xf32> to vector<16x256xf32>
    %7 = arith.addf %4, %6 : vector<16x256xf32>
    %cst = arith.constant 0.000000e+00 : f32
    %8 = vector.broadcast %cst : f32 to vector<16x256xf32>
    %9 = arith.maximumf %7, %8 : vector<16x256xf32>
    %cst_6 = arith.constant 0.000000e+00 : f32
    %10 = vector.broadcast %cst_6 : f32 to vector<1x256xf32>
    %c0_7 = arith.constant 0 : index
    %c0_8 = arith.constant 0 : index
    %11 = vector.load %arg6[%c0_7, %c0_8] : memref<18x256xf32, #tpu.memory_space<vmem>>, vector<1x256xf32>
    tpu.vector_store %arg6[%c0_7, %c0_8], %10 {strides = array<i32>} : memref<18x256xf32, #tpu.memory_space<vmem>>, vector<1x256xf32>,
    %c17 = arith.constant 17 : index
    %c0_9 = arith.constant 0 : index
    %12 = vector.load %arg6[%c17, %c0_9] : memref<18x256xf32, #tpu.memory_space<vmem>>, vector<1x256xf32>
    tpu.vector_store %arg6[%c17, %c0_9], %10 {strides = array<i32>} : memref<18x256xf32, #tpu.memory_space<vmem>>, vector<1x256xf32>,
    %c1 = arith.constant 1 : index
    %c0_10 = arith.constant 0 : index
    %13 = vector.load %arg6[%c1, %c0_10] : memref<18x256xf32, #tpu.memory_space<vmem>>, vector<16x256xf32>
    tpu.vector_store %arg6[%c1, %c0_10], %9 {strides = array<i32>} : memref<18x256xf32, #tpu.memory_space<vmem>>, vector<16x256xf32>,
    %cst_11 = arith.constant 0.000000e+00 : f32
    %14 = vector.broadcast %cst_11 : f32 to vector<16x256xf32>
    %c0_12 = arith.constant 0 : index
    %c0_13 = arith.constant 0 : index
    %15 = vector.load %arg6[%c0_12, %c0_13] : memref<18x256xf32, #tpu.memory_space<vmem>>, vector<16x256xf32>
    %16 = arith.truncf %15 : vector<16x256xf32> to vector<16x256xbf16>
    %c0_14 = arith.constant 0 : index
    %c0_15 = arith.constant 0 : index
    %c0_16 = arith.constant 0 : index
    %17 = vector.load %arg2[%c0_14, %c0_15, %c0_16] : memref<3x256x256xbf16, #tpu.memory_space<vmem>>, vector<1x256x256xbf16>
    %18 = vector.shape_cast %17 : vector<1x256x256xbf16> to vector<256x256xbf16>
    %cst_17 = arith.constant dense<0.000000e+00> : vector<16x256xf32>
    %19 = tpu.matmul %16, %18, %cst_17 {dimension_numbers = #tpu.dot_dimension_numbers<[1], [0], [0], [1], [0, 0, 1, 1], [], []>} : vector<16x256xbf16>, vector<256x256xbf16>, vector<16x256xf32> -> vector<16x256xf32>
    %20 = arith.addf %14, %19 : vector<16x256xf32>
    %c1_18 = arith.constant 1 : index
    %c0_19 = arith.constant 0 : index
    %21 = vector.load %arg6[%c1_18, %c0_19] : memref<18x256xf32, #tpu.memory_space<vmem>>, vector<16x256xf32>
    %22 = arith.truncf %21 : vector<16x256xf32> to vector<16x256xbf16>
    %c1_20 = arith.constant 1 : index
    %c0_21 = arith.constant 0 : index
    %c0_22 = arith.constant 0 : index
    %23 = vector.load %arg2[%c1_20, %c0_21, %c0_22] : memref<3x256x256xbf16, #tpu.memory_space<vmem>>, vector<1x256x256xbf16>
    %24 = vector.shape_cast %23 : vector<1x256x256xbf16> to vector<256x256xbf16>
    %cst_23 = arith.constant dense<0.000000e+00> : vector<16x256xf32>
    %25 = tpu.matmul %22, %24, %cst_23 {dimension_numbers = #tpu.dot_dimension_numbers<[1], [0], [0], [1], [0, 0, 1, 1], [], []>} : vector<16x256xbf16>, vector<256x256xbf16>, vector<16x256xf32> -> vector<16x256xf32>
    %26 = arith.addf %20, %25 : vector<16x256xf32>
    %c2 = arith.constant 2 : index
    %c0_24 = arith.constant 0 : index
    %27 = vector.load %arg6[%c2, %c0_24] : memref<18x256xf32, #tpu.memory_space<vmem>>, vector<16x256xf32>
    %28 = arith.truncf %27 : vector<16x256xf32> to vector<16x256xbf16>
    %c2_25 = arith.constant 2 : index
    %c0_26 = arith.constant 0 : index
    %c0_27 = arith.constant 0 : index
    %29 = vector.load %arg2[%c2_25, %c0_26, %c0_27] : memref<3x256x256xbf16, #tpu.memory_space<vmem>>, vector<1x256x256xbf16>
    %30 = vector.shape_cast %29 : vector<1x256x256xbf16> to vector<256x256xbf16>
    %cst_28 = arith.constant dense<0.000000e+00> : vector<16x256xf32>
    %31 = tpu.matmul %28, %30, %cst_28 {dimension_numbers = #tpu.dot_dimension_numbers<[1], [0], [0], [1], [0, 0, 1, 1], [], []>} : vector<16x256xbf16>, vector<256x256xbf16>, vector<16x256xf32> -> vector<16x256xf32>
    %32 = arith.addf %26, %31 : vector<16x256xf32>
    %c0_29 = arith.constant 0 : index
    %c0_30 = arith.constant 0 : index
    %c0_31 = arith.constant 0 : index
    %33 = vector.load %arg5[%c0_29, %c0_30, %c0_31] : memref<1x16x256xf32, #tpu.memory_space<vmem>>, vector<1x16x256xf32>
    %34 = vector.shape_cast %33 : vector<1x16x256xf32> to vector<16x256xf32>
    %35 = vector.shape_cast %32 : vector<16x256xf32> to vector<1x16x256xf32>
    tpu.vector_store %arg5[%c0_29, %c0_30, %c0_31], %35 {strides = array<i32>} : memref<1x16x256xf32, #tpu.memory_space<vmem>>, vector<1x16x256xf32>,
    return
  }
  func.func @transform_0(%arg0: i32) -> (i32, i32, i32) {
    %c0_i32 = arith.constant 0 : i32
    %c0_i32_0 = arith.constant 0 : i32
    %c0_i32_1 = arith.constant 0 : i32
    return %arg0, %c0_i32, %c0_i32_0 : i32, i32, i32
  }
  func.func @transform_1(%arg0: i32) -> (i32, i32, i32) {
    %c0_i32 = arith.constant 0 : i32
    %c0_i32_0 = arith.constant 0 : i32
    %c0_i32_1 = arith.constant 0 : i32
    %c0_i32_2 = arith.constant 0 : i32
    return %c0_i32, %c0_i32_0, %c0_i32_1 : i32, i32, i32
  }
  func.func @transform_2(%arg0: i32) -> (i32, i32) {
    %c0_i32 = arith.constant 0 : i32
    %c0_i32_0 = arith.constant 0 : i32
    %c0_i32_1 = arith.constant 0 : i32
    return %c0_i32, %c0_i32_0 : i32, i32
  }
  func.func @transform_3(%arg0: i32) -> (i32, i32) {
    %c0_i32 = arith.constant 0 : i32
    %c0_i32_0 = arith.constant 0 : i32
    %c0_i32_1 = arith.constant 0 : i32
    return %c0_i32, %c0_i32_0 : i32, i32
  }
  func.func @transform_4(%arg0: i32) -> (i32, i32, i32) {
    %c0_i32 = arith.constant 0 : i32
    %c0_i32_0 = arith.constant 0 : i32
    %c0_i32_1 = arith.constant 0 : i32
    return %arg0, %c0_i32, %c0_i32_0 : i32, i32, i32
  }
}

</mosaic_0001>

<bundles_post_ra>
// kernel: tile.23
= control target key start
LH: loop header
LB: loop body
LE: loop exit
PB: predicated region body
PF: predicated region fallthrough
CT: control target
= control target key end

     0   :  { %s28_s0 = inlined_call_operand.vmem [shape: f32[8], index: 0, kind: input, shape index: {}]   ;;  %s29_s1 = inlined_call_operand.vmem [shape: f32[16,8], index: 1, kind: output, shape index: {}]  }
   0x1   :  { %v4_v0 = vld [vmem:[%s28_s0] ss:$0 sm:$0xff] }
   0x2   :  { %5 = vst [vmem:[%s29_s1] sm:$0xff] %v4_v0  ;;  %8 = vst [vmem:[%s29_s1 + $0x8] sm:$0xff] %v4_v0 }

// kernel: tile.24
= control target key start
LH: loop header
LB: loop body
LE: loop exit
PB: predicated region body
PF: predicated region fallthrough
CT: control target
= control target key end

     0   :  { %s131_s10 = smov 120   ;;  %s132_s11 = smov 104   ;;  %vm3_vm0 = vcmask 64512   ;;  %vm9_vm1 = vcmask 1048512   ;;  %vm15_vm2 = vcmask 982912   ;;  %vm21_vm3 = vcmask 917312   ;;  %s207_s0 = inlined_call_operand.vmem [shape: f32[16,8], index: 0, kind: input, shape index: {}]   ;;  %s208_s1 = inlined_call_operand.vmem [shape: f32[1,128], index: 1, kind: output, shape index: {}]  }
   0x1   :  { %v101_v0 = vld [vmem:[%s207_s0 + $0xf] sm:$0x1]   ;;  %v103_v1 = vld [vmem:[%s207_s0 + $0xd] sm:$0x1]   ;;  %v102_v2 = vld [vmem:[%s207_s0 + $0xe] sm:$0x1]  }
   0x2   :  { %7 = vrot.lane.b32.xlu0 %v101_v0, %s131_s10  ;;  %19 = vrot.lane.b32.xlu1 %v103_v1, %s132_s11  ;;  %v104_v3 = vld [vmem:[%s207_s0 + $0xc] sm:$0x1]   ;;  %s133_s16 = smov 112   ;;  %s134_s17 = smov 96   ;;  %v105_v4 = vld [vmem:[%s207_s0 + $0xb] sm:$0x1]  }
   0x3   :  { %v106_v5 = vld [vmem:[%s207_s0 + $0xa] sm:$0x1]   ;;  %v2_v6 = vld [vmem:[%s207_s0] sm:$0x1]   ;;  %s135_s24 = smov 88   ;;  %s136_s25 = smov 80  }
   0x4   :  { %4 = vst.msk [vmem:[#allocation0] sm:$0x1] %vm3_vm0, %v2_v6   ;;  %v107_v7 = vld [vmem:[%s207_s0 + $0x9] sm:$0x1]   ;;  %v108_v8 = vld [vmem:[%s207_s0 + $0x8] sm:$0x1]  }
   0x5   :  { %s137_s30 = smov 72   ;;  %s138_s2 = smov 64   ;;  %v109_v9 = vld [vmem:[%s207_s0 + $0x7] sm:$0x1]   ;;  %v110_v10 = vld [vmem:[%s207_s0 + $0x6] sm:$0x1]  }
   0x6   :  { %13 = vrot.lane.b32.xlu0 %v102_v2, %s133_s16  ;;  %25 = vrot.lane.b32.xlu1 %v104_v3, %s134_s17  ;;  %s139_s7 = smov 56   ;;  %s140_s8 = smov 48   ;;  %v111_v11 = vld [vmem:[%s207_s0 + $0x5] sm:$0x1]   ;;  %v112_v12 = vld [vmem:[%s207_s0 + $0x4] sm:$0x1]  }
   0x7   :  { %s141_s13 = smov 40   ;;  %s142_s14 = smov 32   ;;  %v113_v13 = vld [vmem:[%s207_s0 + $0x3] sm:$0x1]   ;;  %v114_v14 = vld [vmem:[%s207_s0 + $0x2] sm:$0x1]  }
   0x8   :  { %s143_s19 = smov 24   ;;  %s144_s20 = smov 16   ;;  %v115_v15 = vld [vmem:[%s207_s0 + $0x1] sm:$0x1]   ;;  %vm27_vm4 = vcmask 851712   ;;  %vm33_vm5 = vcmask 786112  }
   0x9   :  { %s145_s0 = smov 8   ;;  %vm39_vm6 = vcmask 720512   ;;  %vm45_vm7 = vcmask 654912   ;;  %vm51_vm8 = vcmask 589312   ;;  %vm57_vm9 = vcmask 523712  }
   0xa   :  { %31 = vrot.lane.b32.xlu0 %v105_v4, %s135_s24  ;;  %37 = vrot.lane.b32.xlu1 %v106_v5, %s136_s25  ;;  %vm63_vm10 = vcmask 458112   ;;  %vm69_vm11 = vcmask 392512   ;;  %vm75_vm12 = vcmask 326912   ;;  %vm81_vm13 = vcmask 261312  }
   0xb   :  { %vm87_vm14 = vcmask 195712   ;;  %vm93_vm15 = vcmask 130112  }
   0xe   :  { %43 = vrot.lane.b32.xlu0 %v107_v7, %s137_s30  ;;  %49 = vrot.lane.b32.xlu1 %v108_v8, %s138_s2 }
  0x12   :  { %55 = vrot.lane.b32.xlu0 %v109_v9, %s139_s7  ;;  %61 = vrot.lane.b32.xlu1 %v110_v10, %s140_s8 }
  0x16   :  { %67 = vrot.lane.b32.xlu0 %v111_v11, %s141_s13  ;;  %73 = vrot.lane.b32.xlu1 %v112_v12, %s142_s14 }
  0x1a   :  { %79 = vrot.lane.b32.xlu0 %v113_v13, %s143_s19  ;;  %85 = vrot.lane.b32.xlu1 %v114_v14, %s144_s20 }
  0x1e   :  { %91 = vrot.lane.b32.xlu0 %v115_v15, %s145_s0 }
  0x74   :  { %v8_v16 = vpop.permute.xlu0 %7   ;;  %v20_v17 = vpop.permute.xlu1 %19  }
  0x75   :  { %10 = vst.msk [vmem:[#allocation0] sm:$0x1] %vm9_vm1, %v8_v16  }
  0x78   :  { %v14_v18 = vpop.permute.xlu0 %13   ;;  %v26_v19 = vpop.permute.xlu1 %25  }
  0x79   :  { %16 = vst.msk [vmem:[#allocation0] sm:$0x1] %vm15_vm2, %v14_v18  }
  0x7a   :  { %22 = vst.msk [vmem:[#allocation0] sm:$0x1] %vm21_vm3, %v20_v17  }
  0x7b   :  { %28 = vst.msk [vmem:[#allocation0] sm:$0x1] %vm27_vm4, %v26_v19  }
  0x7c   :  { %v32_v20 = vpop.permute.xlu0 %31   ;;  %v38_v21 = vpop.permute.xlu1 %37  }
  0x7d   :  { %34 = vst.msk [vmem:[#allocation0] sm:$0x1] %vm33_vm5, %v32_v20  }
  0x7e   :  { %40 = vst.msk [vmem:[#allocation0] sm:$0x1] %vm39_vm6, %v38_v21  }
  0x80   :  { %v44_v22 = vpop.permute.xlu0 %43   ;;  %v50_v23 = vpop.permute.xlu1 %49  }
  0x81   :  { %46 = vst.msk [vmem:[#allocation0] sm:$0x1] %vm45_vm7, %v44_v22  }
  0x82   :  { %52 = vst.msk [vmem:[#allocation0] sm:$0x1] %vm51_vm8, %v50_v23  }
  0x84   :  { %v56_v24 = vpop.permute.xlu0 %55   ;;  %v62_v25 = vpop.permute.xlu1 %61  }
  0x85   :  { %58 = vst.msk [vmem:[#allocation0] sm:$0x1] %vm57_vm9, %v56_v24  }
  0x86   :  { %64 = vst.msk [vmem:[#allocation0] sm:$0x1] %vm63_vm10, %v62_v25  }
  0x88   :  { %v68_v26 = vpop.permute.xlu0 %67   ;;  %v74_v27 = vpop.permute.xlu1 %73  }
  0x89   :  { %70 = vst.msk [vmem:[#allocation0] sm:$0x1] %vm69_vm11, %v68_v26  }
  0x8a   :  { %76 = vst.msk [vmem:[#allocation0] sm:$0x1] %vm75_vm12, %v74_v27  }
  0x8c   :  { %v80_v28 = vpop.permute.xlu0 %79   ;;  %v86_v29 = vpop.permute.xlu1 %85  }
  0x8d   :  { %82 = vst.msk [vmem:[#allocation0] sm:$0x1] %vm81_vm13, %v80_v28  }
  0x8e   :  { %88 = vst.msk [vmem:[#allocation0] sm:$0x1] %vm87_vm14, %v86_v29  }
  0x90   :  { %v92_v30 = vpop.permute.xlu0 %91  }
  0x91   :  { %94 = vst.msk [vmem:[#allocation0] sm:$0x1] %vm93_vm15, %v92_v30  }
  0x98   :  { %v98_v31 = vld [vmem:[#allocation0] sm:$0x1] }
  0x99   :  { %100 = vst [vmem:[%s208_s1] sm:$0x1] %v98_v31 }

// kernel: basic_block_sub.2
= control target key start
LH: loop header
LB: loop body
LE: loop exit
PB: predicated region body
PF: predicated region fallthrough
CT: control target
= control target key end

     0   :  { %s936_s15 = smov 0   ;;  %s1116_s0 = inlined_call_operand.vmem [shape: f32[2,16,128], index: 0, kind: input, shape index: {}]   ;;  %s1117_s1 = inlined_call_operand.vmem [shape: bf16[3,128,256], index: 1, kind: input, shape index: {}]   ;;  %s1118_s2 = inlined_call_operand.vmem [shape: f32[1,128], index: 2, kind: input, shape index: {}]   ;;  %s1119_s3 = inlined_call_operand.vmem [shape: f32[1,128], index: 3, kind: input, shape index: {}]   ;;  %s1120_s4 = inlined_call_operand.vmem [shape: f32[2,16,256], index: 4, kind: output, shape index: {}]  }
   0x1 LB: > { %s716_s16 = sadd.s32 4294967295, %s907_s15   ;;  %p720_p0 = scmp.ge.s32.totalorder %s907_s15, 1  ;;  %s907_s15 = sphi %s936_s15, %s14_s15  }
   0x2   : > { %p162_p1 = scmp.lt.s32.totalorder %s907_s15, 3 }
   0x4   : > { %p163_p2 = pnand %p720_p0, %p162_p1 }
   0x5   : > { %v829_v0 = vld [vmem:[%s1117_s1 + $0x4] ss:$8 sps:$4 sm:$0xff] (!%p163_p2)   ;;  %p947_p3 = scmp.lt.s32.totalorder (!%p163_p2), %s716_s16, 1  ;;  %v831_v1 = vld [vmem:[%s1117_s1] ss:$8 sps:$4 sm:$0xff] (!%p163_p2)   ;;  %v909_v2 = vmov (!%p163_p2), 0  }
   0x6   : > { %166 = sbr.rel (%p163_p2) target bundleno = 289 (0x121), region = 36  ;;  %499 = vmatprep.mubr.bf16.mxu0 (!%p163_p2), %v909_v2  ;;  %376 = vmatprep.mubr.bf16.mxu1 (!%p163_p2), %v909_v2  ;;  %v832_v3 = vld [vmem:[%s1117_s1 + $0x14] ss:$8 sps:$4 sm:$0xff] (!%p163_p2)   ;;  %v910_v4 = vmov (!%p163_p2), 0.0   ;;  %v834_v5 = vld [vmem:[%s1117_s1 + $0x10] ss:$8 sps:$4 sm:$0xff] (!%p163_p2)  }
   0x7   : > { %467 = vmatprep.subr.bf16.mxu0 (!%p163_p2), %v829_v0  ;;  %221 = vst [vmem:[#allocation2] sm:$0x1] (!%p163_p2), %v910_v4  ;;  %222 = vst [vmem:[#allocation2 + $0x11] sm:$0x1] (!%p163_p2), %v910_v4  ;;  %v835_v6 = vld [vmem:[%s1117_s1 + $0x24] ss:$8 sps:$4 sm:$0xff] (!%p163_p2)  }
   0x8   : > { %468 = vmatpush1.bf16.msra.mxu0 (!%p163_p2), %v831_v1  ;;  %v837_v7 = vld [vmem:[%s1117_s1 + $0x20] ss:$8 sps:$4 sm:$0xff] (!%p163_p2)   ;;  %v838_v8 = vld [vmem:[%s1117_s1 + $0x34] ss:$8 sps:$4 sm:$0xff] (!%p163_p2)   ;;  %v840_v9 = vld [vmem:[%s1117_s1 + $0x30] ss:$8 sps:$4 sm:$0xff] (!%p163_p2)  }
   0x9   : > { %469 = vmatprep.subr.bf16.mxu0 (!%p163_p2), %v832_v3  ;;  %v852_v10 = vld [vmem:[%s1117_s1 + $0x84] ss:$8 sps:$4 sm:$0xff] (!%p163_p2)   ;;  %v855_v11 = vld [vmem:[%s1117_s1 + $0x80] ss:$8 sps:$4 sm:$0xff] (!%p163_p2)   ;;  %v859_v14 = vld [vmem:[%s1117_s1 + $0x94] ss:$8 sps:$4 sm:$0xff] (!%p163_p2)  }
   0xa   : > { %v841_v12 = vld [vmem:[%s1117_s1 + $0x44] ss:$8 sps:$4 sm:$0xff] (!%p163_p2)   ;;  %v843_v13 = vld [vmem:[%s1117_s1 + $0x40] ss:$8 sps:$4 sm:$0xff] (!%p163_p2)   ;;  %344 = vmatprep.subr.bf16.mxu1 (!%p163_p2), %v852_v10  ;;  %v861_v19 = vld [vmem:[%s1117_s1 + $0x90] ss:$8 sps:$4 sm:$0xff] (!%p163_p2)  }
   0xb   : > { %345 = vmatpush1.bf16.msra.mxu1 (!%p163_p2), %v855_v11  ;;  %v725_v17 = vld [vmem:[%s1118_s2] ss:$0 sm:$0xff] (!%p163_p2)  ;;  %v844_v20 = vld [vmem:[%s1117_s1 + $0x54] ss:$8 sps:$4 sm:$0xff] (!%p163_p2)   ;;  %v865_v25 = vld [vmem:[%s1117_s1 + $0xa4] ss:$8 sps:$4 sm:$0xff] (!%p163_p2)  }
   0xc   : > { %470 = vmatpush1.bf16.msra.mxu0 (!%p163_p2), %v834_v5  ;;  %v726_v18 = vld [vmem:[%s1119_s3] ss:$0 sm:$0xff] (!%p163_p2)  ;;  %346 = vmatprep.subr.bf16.mxu1 (!%p163_p2), %v859_v14  ;;  %v846_v27 = vld [vmem:[%s1117_s1 + $0x50] ss:$8 sps:$4 sm:$0xff] (!%p163_p2)   ;;  %v847_v28 = vld [vmem:[%s1117_s1 + $0x64] ss:$8 sps:$4 sm:$0xff] (!%p163_p2)  }
   0xd   : > { %s1123_s16 = smov (!%p947_p3, %s716_s16), 1  ;;  %471 = vmatprep.subr.bf16.mxu0 %v835_v6  ;;  %v867_v26 = vld [vmem:[%s1117_s1 + $0xa0] ss:$8 sps:$4 sm:$0xff]   ;;  %v871_v31 = vld [vmem:[%s1117_s1 + $0xb4] ss:$8 sps:$4 sm:$0xff]  }
   0xe   : > { %s809_s6 = sshll.u32 %s1123_s16, 4  ;;  %v873_v32 = vld [vmem:[%s1117_s1 + $0xb0] ss:$8 sps:$4 sm:$0xff]   ;;  %v849_v33 = vld [vmem:[%s1117_s1 + $0x60] ss:$8 sps:$4 sm:$0xff]   ;;  %s810_s26 = sshll.u32 %s1123_s16, 5 }
   0xf   : > { %s192_s17 = scalar_lea.vmem %s1116_s0, %s809_s6  ;;  %347 = vmatpush1.bf16.msra.mxu1 %v861_v19  ;;  %v877_v34 = vld [vmem:[%s1117_s1 + $0xc4] ss:$8 sps:$4 sm:$0xff]   ;;  %v850_v35 = vld [vmem:[%s1117_s1 + $0x74] ss:$8 sps:$4 sm:$0xff]   ;;  %v879_v36 = vld [vmem:[%s1117_s1 + $0xc0] ss:$8 sps:$4 sm:$0xff]   ;;  %s197_s29 = scalar_lea.vmem %s1120_s4, %s810_s26 }
  0x10   : > { %472 = vmatpush1.bf16.msra.mxu0 %v837_v7  ;;  %v199_v15 = vld [vmem:[%s192_s17] sm:$0xff]  ;;  %v200_v16 = vld [vmem:[%s192_s17 + $0x8] sm:$0xff]  ;;  %348 = vmatprep.subr.bf16.mxu1 %v865_v25  ;;  %v854_v37 = vld [vmem:[%s1117_s1 + $0x70] ss:$8 sps:$4 sm:$0xff]  }
  0x11   : > { %473 = vmatprep.subr.bf16.mxu0 %v838_v8  ;;  %v208_v21 = vmul.f32 %v725_v17, %v199_v15  ;;  %v209_v22 = vmul.f32 %v725_v17, %v200_v16  ;;  %v883_v38 = vld [vmem:[%s1117_s1 + $0xd4] ss:$8 sps:$4 sm:$0xff]   ;;  %v858_v39 = vld [vmem:[%s1117_s1 + $0x104] ss:$8 sps:$4 sm:$0xff]   ;;  %v856_v40 = vld [vmem:[%s1117_s1 + $0x100] ss:$8 sps:$4 sm:$0xff]  }
  0x12   : > { %v885_v44 = vld [vmem:[%s1117_s1 + $0xd0] ss:$8 sps:$4 sm:$0xff]   ;;  %v889_v45 = vld [vmem:[%s1117_s1 + $0xe4] ss:$8 sps:$4 sm:$0xff]   ;;  %v864_v46 = vld [vmem:[%s1117_s1 + $0x114] ss:$8 sps:$4 sm:$0xff]  }
  0x13   : > { %v217_v23 = vadd.f32 %v726_v18, %v208_v21  ;;  %v218_v24 = vadd.f32 %v726_v18, %v209_v22  ;;  %349 = vmatpush1.bf16.msra.mxu1 %v867_v26  ;;  %v891_v47 = vld [vmem:[%s1117_s1 + $0xe0] ss:$8 sps:$4 sm:$0xff]   ;;  %v862_v48 = vld [vmem:[%s1117_s1 + $0x110] ss:$8 sps:$4 sm:$0xff]   ;;  %v895_v49 = vld [vmem:[%s1117_s1 + $0xf4] ss:$8 sps:$4 sm:$0xff]  }
  0x14   : > { %474 = vmatpush1.bf16.msra.mxu0 %v840_v9  ;;  %350 = vmatprep.subr.bf16.mxu1 %v871_v31  ;;  %v870_v50 = vld [vmem:[%s1117_s1 + $0x124] ss:$8 sps:$4 sm:$0xff]   ;;  %v897_v51 = vld [vmem:[%s1117_s1 + $0xf0] ss:$8 sps:$4 sm:$0xff]   ;;  %v868_v52 = vld [vmem:[%s1117_s1 + $0x120] ss:$8 sps:$4 sm:$0xff]  }
  0x15   : > { %475 = vmatprep.subr.bf16.mxu0 %v841_v12  ;;  %v219_v29 = vmax.f32 %v217_v23, 0.0  ;;  %v220_v30 = vmax.f32 %v218_v24, 0.0  ;;  %v876_v53 = vld [vmem:[%s1117_s1 + $0x134] ss:$8 sps:$4 sm:$0xff]   ;;  %v874_v55 = vld [vmem:[%s1117_s1 + $0x130] ss:$8 sps:$4 sm:$0xff]  }
  0x16   : > { %v882_v56 = vld [vmem:[%s1117_s1 + $0x144] ss:$8 sps:$4 sm:$0xff]   ;;  %v880_v57 = vld [vmem:[%s1117_s1 + $0x140] ss:$8 sps:$4 sm:$0xff]   ;;  %v888_v58 = vld [vmem:[%s1117_s1 + $0x154] ss:$8 sps:$4 sm:$0xff]  }
  0x17   : > { %223 = vst [vmem:[#allocation2 + $0x1] sm:$0xff] %v219_v29  ;;  %224 = vst [vmem:[#allocation2 + $0x9] sm:$0xff] %v220_v30  ;;  %351 = vmatpush1.bf16.msra.mxu1 %v873_v32  ;;  %v246_v54 = vpack.c.bf16 %v220_v30, %v219_v29  ;;  %v886_v59 = vld [vmem:[%s1117_s1 + $0x150] ss:$8 sps:$4 sm:$0xff]   ;;  %v894_v60 = vld [vmem:[%s1117_s1 + $0x164] ss:$8 sps:$4 sm:$0xff]  }
  0x18   : > { %476 = vmatpush1.bf16.msra.mxu0 %v843_v13  ;;  %352 = vmatprep.subr.bf16.mxu1 %v877_v34  ;;  %v892_v61 = vld [vmem:[%s1117_s1 + $0x160] ss:$8 sps:$4 sm:$0xff]   ;;  %v900_v62 = vld [vmem:[%s1117_s1 + $0x174] ss:$8 sps:$4 sm:$0xff]   ;;  %v898_v63 = vld [vmem:[%s1117_s1 + $0x170] ss:$8 sps:$4 sm:$0xff]  }
  0x19   : > { %477 = vmatprep.subr.bf16.mxu0 %v844_v20 }
  0x1b   : > { %353 = vmatpush1.bf16.msra.mxu1 %v879_v36 }
  0x1c   : > { %478 = vmatpush1.bf16.msra.mxu0 %v846_v27  ;;  %354 = vmatprep.subr.bf16.mxu1 %v883_v38 }
  0x1d   : > { %479 = vmatprep.subr.bf16.mxu0 %v847_v28 }
  0x1e   : > { %v225_v41 = vld [vmem:[#allocation2] sm:$0xff]  ;;  %v226_v42 = vld [vmem:[#allocation2 + $0x8] sm:$0xff] }
  0x1f   : > { %v227_v43 = vpack.c.bf16 %v226_v42, %v225_v41  ;;  %355 = vmatpush1.bf16.msra.mxu1 %v885_v44  ;;  %v510_v0 = vld [vmem:[#allocation2 + $0x2] sm:$0xff]  ;;  %v511_v1 = vld [vmem:[#allocation2 + $0xa] sm:$0xff] }
  0x20   : > { %480 = vmatpush1.bf16.msra.mxu0 %v849_v33  ;;  %356 = vmatprep.subr.bf16.mxu1 %v889_v45 }
  0x21   : > { %481 = vmatprep.subr.bf16.mxu0 %v850_v35 }
  0x23   : > { %357 = vmatpush1.bf16.msra.mxu1 %v891_v47 }
  0x24   : > { %482 = vmatpush1.bf16.msra.mxu0 %v854_v37  ;;  %358 = vmatprep.subr.bf16.mxu1 %v895_v49 }
  0x25   : > { %610 = vmatprep.subr.bf16.mxu0 %v858_v39 }
  0x27   : > { %500 = vmatmul.mubr.bf16.vlgmr.msra.gmra.mrb[0].mxu0 %v227_v43  ;;  %359 = vmatpush1.bf16.msra.mxu1 %v897_v51 }
  0x28   : > { %611 = vmatpush1.bf16.msra.mxu0 %v856_v40  ;;  %642 = vmatprep.mubr.bf16.mxu0 %v909_v2  ;;  %v512_v2 = vpack.c.bf16 %v511_v1, %v510_v0 }
  0x29   : > { %612 = vmatprep.subr.bf16.mxu0 %v864_v46 }
  0x2a   : > { %377 = vmatmul.mubr.bf16.vlgmr.msra.gmra.mrb[0].mxu1 %v246_v54 }
  0x2c   : > { %613 = vmatpush1.bf16.msra.mxu0 %v862_v48 }
  0x2d   : > { %614 = vmatprep.subr.bf16.mxu0 %v870_v50 }
  0x30   : > { %615 = vmatpush1.bf16.msra.mxu0 %v868_v52 }
  0x31   : > { %616 = vmatprep.subr.bf16.mxu0 %v876_v53 }
  0x34   : > { %617 = vmatpush1.bf16.msra.mxu0 %v874_v55 }
  0x35   : > { %618 = vmatprep.subr.bf16.mxu0 %v882_v56 }
  0x38   : > { %619 = vmatpush1.bf16.msra.mxu0 %v880_v57 }
  0x39   : > { %620 = vmatprep.subr.bf16.mxu0 %v888_v58 }
  0x3c   : > { %621 = vmatpush1.bf16.msra.mxu0 %v886_v59 }
  0x3d   : > { %622 = vmatprep.subr.bf16.mxu0 %v894_v60 }
  0x40   : > { %623 = vmatpush1.bf16.msra.mxu0 %v892_v61 }
  0x41   : > { %624 = vmatprep.subr.bf16.mxu0 %v900_v62 }
  0x44   : > { %625 = vmatpush1.bf16.msra.mxu0 %v898_v63 }
  0x47   : > { %643 = vmatmul.mubr.bf16.vlgmr.msra.gmra.mrb[0].mxu0 %v512_v2 }
  0xfd   : > { %v378_v3 = vpop.f32.mrb[0].mxu1 }
  0xfe   : > { %v380_v4 = vpop.f32.mrb[1].mxu1 }
  0xff   : > { %v382_v5 = vpop.f32.mrb[2].mxu1 }
 0x100   : > { %v384_v6 = vpop.f32.mrb[3].mxu1 }
 0x11a   : > { %v644_v7 = vpop.f32.mrb[0].mxu0 }
 0x11b   : > { %v811_v8 = vadd.f32 %v644_v7, %v378_v3  ;;  %v646_v9 = vpop.f32.mrb[1].mxu0 }
 0x11c   : > { %v812_v10 = vadd.f32 %v646_v9, %v380_v4  ;;  %v648_v11 = vpop.f32.mrb[2].mxu0 }
 0x11d   : > { %657 = vst [vmem:[%s197_s29] sm:$0xff] %v811_v8  ;;  %v813_v12 = vadd.f32 %v648_v11, %v382_v5  ;;  %v650_v13 = vpop.f32.mrb[3].mxu0 }
 0x11e   : > { %658 = vst [vmem:[%s197_s29 + $0x8] sm:$0xff] %v812_v10  ;;  %v814_v14 = vadd.f32 %v650_v13, %v384_v6 }
 0x11f   : > { %659 = vst [vmem:[%s197_s29 + $0x10] sm:$0xff] %v813_v12 }
 0x120   : > { %660 = vst [vmem:[%s197_s29 + $0x18] sm:$0xff] %v814_v14 }
 0x121 PF: > { %s14_s15 = sadd.s32 1, %s907_s15  }
 0x122   : > { %p11_p4 = scmp.ge.s32.totalorder %s14_s15, 4  }
 0x124   :  { %13 = sbr.rel (!%p11_p4) target bundleno = 1 (0x1), region = 68 }

// kernel: tile.33
= control target key start
LH: loop header
LB: loop body
LE: loop exit
PB: predicated region body
PF: predicated region fallthrough
CT: control target
= control target key end

     0   :  { %s28_s0 = inlined_call_operand.vmem [shape: f32[16], index: 0, kind: input, shape index: {}]   ;;  %s29_s1 = inlined_call_operand.vmem [shape: f32[16,16], index: 1, kind: output, shape index: {}]  }
   0x1   :  { %v4_v0 = vld [vmem:[%s28_s0] ss:$0 sm:$0xff] }
   0x2   :  { %5 = vst [vmem:[%s29_s1] sm:$0xff] %v4_v0  ;;  %8 = vst [vmem:[%s29_s1 + $0x8] sm:$0xff] %v4_v0 }

// kernel: tile.34
= control target key start
LH: loop header
LB: loop body
LE: loop exit
PB: predicated region body
PF: predicated region fallthrough
CT: control target
= control target key end

     0   :  { %s7_s6 = smov 3  ;;  %s21_s9 = smov 3  ;;  %vm4_vm0 = vcmask 130048   ;;  %vm11_vm1 = vcmask 1048448   ;;  %vm18_vm2 = vcmask 917248   ;;  %vm25_vm3 = vcmask 786048   ;;  %s128_s0 = inlined_call_operand.vmem [shape: f32[16,16], index: 0, kind: input, shape index: {}]   ;;  %s129_s1 = inlined_call_operand.vmem [shape: f32[1,256], index: 1, kind: output, shape index: {}]  }
   0x1   :  { %v66_v0 = vld [vmem:[%s128_s0 + $0x7] ss:$8 sm:%s7_s6]   ;;  %s81_s10 = smov 112   ;;  %v68_v1 = vld [vmem:[%s128_s0 + $0x5] ss:$8 sm:%s21_s9]   ;;  %s14_s13 = smov 3 }
   0x2   :  { %9 = vrot.lane.b32.xlu0 %v66_v0, %s81_s10  ;;  %s82_s14 = smov 80   ;;  %v67_v2 = vld [vmem:[%s128_s0 + $0x6] ss:$8 sm:%s14_s13]   ;;  %s28_s17 = smov 3  ;;  %vm32_vm4 = vcmask 654848   ;;  %vm39_vm5 = vcmask 523648  }
   0x3   :  { %23 = vrot.lane.b32.xlu1 %v68_v1, %s82_s14  ;;  %v69_v3 = vld [vmem:[%s128_s0 + $0x4] ss:$8 sm:%s28_s17]   ;;  %s35_s20 = smov 3  ;;  %s42_s21 = smov 3  ;;  %vm46_vm6 = vcmask 392448   ;;  %vm53_vm7 = vcmask 261248  }
   0x4   :  { %s83_s22 = smov 96   ;;  %s84_s23 = smov 64   ;;  %v70_v4 = vld [vmem:[%s128_s0 + $0x3] ss:$8 sm:%s35_s20]   ;;  %v71_v5 = vld [vmem:[%s128_s0 + $0x2] ss:$8 sm:%s42_s21]  }
   0x5   :  { %s2_s26 = smov 3  ;;  %s49_s29 = smov 3 }
   0x6   :  { %16 = vrot.lane.b32.xlu0 %v67_v2, %s83_s22  ;;  %v3_v6 = vld [vmem:[%s128_s0] ss:$8 sm:%s2_s26]   ;;  %s85_s3 = smov 48   ;;  %s86_s4 = smov 32  }
   0x7   :  { %30 = vrot.lane.b32.xlu1 %v69_v3, %s84_s23  ;;  %5 = vst.msk [vmem:[#allocation0] ss:$8 sm:$0x3] %vm4_vm0, %v3_v6   ;;  %v72_v7 = vld [vmem:[%s128_s0 + $0x1] ss:$8 sm:%s49_s29]   ;;  %s87_s0 = smov 16  }
   0xa   :  { %37 = vrot.lane.b32.xlu0 %v70_v4, %s85_s3 }
   0xb   :  { %44 = vrot.lane.b32.xlu1 %v71_v5, %s86_s4 }
   0xe   :  { %51 = vrot.lane.b32.xlu0 %v72_v7, %s87_s0 }
  0x74   :  { %v10_v8 = vpop.permute.xlu0 %9  }
  0x75   :  { %12 = vst.msk [vmem:[#allocation0] ss:$8 sm:$0x3] %vm11_vm1, %v10_v8   ;;  %v24_v9 = vpop.permute.xlu1 %23  }
  0x78   :  { %v17_v10 = vpop.permute.xlu0 %16  }
  0x79   :  { %19 = vst.msk [vmem:[#allocation0] ss:$8 sm:$0x3] %vm18_vm2, %v17_v10   ;;  %v31_v11 = vpop.permute.xlu1 %30  }
  0x7a   :  { %26 = vst.msk [vmem:[#allocation0] ss:$8 sm:$0x3] %vm25_vm3, %v24_v9  }
  0x7b   :  { %33 = vst.msk [vmem:[#allocation0] ss:$8 sm:$0x3] %vm32_vm4, %v31_v11  }
  0x7c   :  { %v38_v12 = vpop.permute.xlu0 %37  }
  0x7d   :  { %40 = vst.msk [vmem:[#allocation0] ss:$8 sm:$0x3] %vm39_vm5, %v38_v12   ;;  %v45_v13 = vpop.permute.xlu1 %44  }
  0x7e   :  { %47 = vst.msk [vmem:[#allocation0] ss:$8 sm:$0x3] %vm46_vm6, %v45_v13  }
  0x80   :  { %v52_v14 = vpop.permute.xlu0 %51  }
  0x81   :  { %54 = vst.msk [vmem:[#allocation0] ss:$8 sm:$0x3] %vm53_vm7, %v52_v14  }
  0x88   :  { %v58_v15 = vld [vmem:[#allocation0] sm:$0x1]  ;;  %v62_v16 = vld [vmem:[#allocation0 + $0x8] sm:$0x1] }
  0x89   :  { %60 = vst [vmem:[%s129_s1] sm:$0x1] %v58_v15  ;;  %73 = vst [vmem:[%s129_s1 + $0x1] sm:$0x1] %v62_v16 }

// kernel: basic_block_sub.3
= control target key start
LH: loop header
LB: loop body
LE: loop exit
PB: predicated region body
PF: predicated region fallthrough
CT: control target
= control target key end

     0   :  { %s1470_s15 = smov 0   ;;  %s1804_s0 = inlined_call_operand.vmem [shape: f32[2,16,256], index: 0, kind: input, shape index: {}]   ;;  %s1805_s1 = inlined_call_operand.vmem [shape: bf16[3,256,256], index: 1, kind: input, shape index: {}]   ;;  %s1806_s2 = inlined_call_operand.vmem [shape: f32[1,256], index: 2, kind: input, shape index: {}]   ;;  %s1807_s3 = inlined_call_operand.vmem [shape: f32[1,256], index: 3, kind: input, shape index: {}]   ;;  %s1808_s4 = inlined_call_operand.vmem [shape: f32[2,16,256], index: 4, kind: output, shape index: {}]  }
   0x1 LB: > { %s1102_s16 = sadd.s32 4294967295, %s1442_s15   ;;  %p1106_p0 = scmp.ge.s32.totalorder %s1442_s15, 1  ;;  %s1442_s15 = sphi %s1470_s15, %s14_s15  }
   0x2   : > { %p162_p1 = scmp.lt.s32.totalorder %s1442_s15, 3 }
   0x4   : > { %p163_p2 = pnand %p1106_p0, %p162_p1 }
   0x5   : > { %v1292_v0 = vld [vmem:[%s1805_s1 + $0x4] ss:$8 sps:$4 sm:$0xff] (!%p163_p2)   ;;  %v1294_v1 = vld [vmem:[%s1805_s1] ss:$8 sps:$4 sm:$0xff] (!%p163_p2)   ;;  %v1295_v2 = vld [vmem:[%s1805_s1 + $0x14] ss:$8 sps:$4 sm:$0xff] (!%p163_p2)   ;;  %v204_v3 = vlaneseq (!%p163_p2) }
   0x6   : > { %166 = sbr.rel (%p163_p2) target bundleno = 352 (0x160), region = 36  ;;  %739 = vmatprep.subr.bf16.mxu0 (!%p163_p2), %v1292_v0  ;;  %v1297_v4 = vld [vmem:[%s1805_s1 + $0x10] ss:$8 sps:$4 sm:$0xff] (!%p163_p2)   ;;  %v1298_v5 = vld [vmem:[%s1805_s1 + $0x24] ss:$8 sps:$4 sm:$0xff] (!%p163_p2)   ;;  %v1444_v6 = vmov (!%p163_p2), 0.0  }
   0x7   : > { %740 = vmatpush1.bf16.msra.mxu0 (!%p163_p2), %v1294_v1  ;;  %vm240_vm0 = vcmp.lt.s32.totalorder (!%p163_p2), %v204_v3, 256  ;;  %v1300_v7 = vld [vmem:[%s1805_s1 + $0x20] ss:$8 sps:$4 sm:$0xff] (!%p163_p2)   ;;  %v1301_v8 = vld [vmem:[%s1805_s1 + $0x34] ss:$8 sps:$4 sm:$0xff] (!%p163_p2)   ;;  %p188_p3 = scmp.lt.s32.totalorder (!%p163_p2), %s1102_s16, 1 }
   0x8   : > { %741 = vmatprep.subr.bf16.mxu0 (!%p163_p2), %v1295_v2  ;;  %242 = vst.msk [vmem:[#allocation2] ss:$8 sm:$0x3] (!%p163_p2), %vm240_vm0, %v1444_v6  ;;  %245 = vst.msk [vmem:[#allocation2 + $0x21] ss:$8 sm:$0x3] (!%p163_p2), %vm240_vm0, %v1444_v6 }
   0x9   : > { %v1303_v9 = vld [vmem:[%s1805_s1 + $0x30] ss:$8 sps:$4 sm:$0xff] (!%p163_p2)   ;;  %v1304_v10 = vld [vmem:[%s1805_s1 + $0x44] ss:$8 sps:$4 sm:$0xff] (!%p163_p2)   ;;  %v1306_v11 = vld [vmem:[%s1805_s1 + $0x40] ss:$8 sps:$4 sm:$0xff] (!%p163_p2)  }
   0xa   : > { %v1307_v12 = vld [vmem:[%s1805_s1 + $0x54] ss:$8 sps:$4 sm:$0xff] (!%p163_p2)   ;;  %v205_v13 = vshrl.u32 (!%p163_p2), %v204_v3, 7  ;;  %v1309_v14 = vld [vmem:[%s1805_s1 + $0x50] ss:$8 sps:$4 sm:$0xff] (!%p163_p2)   ;;  %vm251_vm1 = vcmask (!%p163_p2), 1040384  }
   0xb   : > { %742 = vmatpush1.bf16.msra.mxu0 (!%p163_p2), %v1297_v4  ;;  %v1310_v15 = vld [vmem:[%s1805_s1 + $0x64] ss:$8 sps:$4 sm:$0xff] (!%p163_p2)   ;;  %v1312_v18 = vld [vmem:[%s1805_s1 + $0x60] ss:$8 sps:$4 sm:$0xff] (!%p163_p2)   ;;  %v1313_v20 = vld [vmem:[%s1805_s1 + $0x74] ss:$8 sps:$4 sm:$0xff] (!%p163_p2)  }
   0xc   : > { %743 = vmatprep.subr.bf16.mxu0 (!%p163_p2), %v1298_v5  ;;  %v206_v16 = vsub.s32 (!%p163_p2), 0, %v205_v13  ;;  %v210_v17 = vsub.s32 (!%p163_p2), 1, %v205_v13  ;;  %v1339_v19 = vld [vmem:[%s1805_s1 + $0x104] ss:$8 sps:$4 sm:$0xff] (!%p163_p2)   ;;  %v1342_v21 = vld [vmem:[%s1805_s1 + $0x100] ss:$8 sps:$4 sm:$0xff] (!%p163_p2)  }
   0xd   : > { %s1810_s16 = smov (!%p188_p3, %s1102_s16), 1  ;;  %536 = vmatprep.subr.bf16.mxu1 %v1339_v19  ;;  %v202_v25 = vld [vmem:[%s1806_s2] sm:$0x3]  ;;  %v1315_v29 = vld [vmem:[%s1805_s1 + $0x70] ss:$8 sps:$4 sm:$0xff]   ;;  %vm827_vm2 = vcmask 1046528  }
   0xe   : > { %s1273_s13 = sshll.u32 %s1810_s16, 5  ;;  %537 = vmatpush1.bf16.msra.mxu1 %v1342_v21  ;;  %v207_v26 = vrot.slane %v202_v25, %v206_v16  ;;  %v211_v27 = vrot.slane %v202_v25, %v210_v17  ;;  %v218_v28 = vld [vmem:[%s1807_s3] sm:$0x3]  ;;  %v1346_v35 = vld [vmem:[%s1805_s1 + $0x114] ss:$8 sps:$4 sm:$0xff]  }
   0xf   : > { %744 = vmatpush1.bf16.msra.mxu0 %v1300_v7  ;;  %s192_s20 = scalar_lea.vmem %s1804_s0, %s1273_s13  ;;  %v223_v30 = vrot.slane %v218_v28, %v206_v16  ;;  %v227_v31 = vrot.slane %v218_v28, %v210_v17  ;;  %v1348_v38 = vld [vmem:[%s1805_s1 + $0x110] ss:$8 sps:$4 sm:$0xff]   ;;  %v1316_v39 = vld [vmem:[%s1805_s1 + $0x84] ss:$8 sps:$4 sm:$0xff]   ;;  %538 = vmatprep.subr.bf16.mxu1 %v1346_v35  ;;  %v1354_v45 = vld [vmem:[%s1805_s1 + $0x120] ss:$8 sps:$4 sm:$0xff]   ;;  %s197_s8 = scalar_lea.vmem %s1808_s4, %s1273_s13 }
  0x10   : > { %745 = vmatprep.subr.bf16.mxu0 %v1301_v8  ;;  %v199_v22 = vld [vmem:[%s192_s20 + $0x8] sm:$0xff]  ;;  %v200_v23 = vld [vmem:[%s192_s20 + $0x10] sm:$0xff]  ;;  %v201_v24 = vld [vmem:[%s192_s20 + $0x18] sm:$0xff]  ;;  %vm349_vm3 = vsmask.f32 7424 }
  0x11   : > { %v215_v32 = vmul.f32 %v211_v27, %v199_v22  ;;  %v216_v33 = vmul.f32 %v207_v26, %v200_v23  ;;  %v217_v34 = vmul.f32 %v211_v27, %v201_v24  ;;  %v198_v36 = vld [vmem:[%s192_s20] sm:$0xff]  ;;  %v1319_v50 = vld [vmem:[%s1805_s1 + $0x94] ss:$8 sps:$4 sm:$0xff]   ;;  %v1360_v57 = vld [vmem:[%s1805_s1 + $0x130] ss:$8 sps:$4 sm:$0xff]  }
  0x12   : > { %v214_v37 = vmul.f32 %v207_v26, %v198_v36  ;;  %539 = vmatpush1.bf16.msra.mxu1 %v1348_v38  ;;  %v1352_v44 = vld [vmem:[%s1805_s1 + $0x124] ss:$8 sps:$4 sm:$0xff]   ;;  %v1318_v49 = vld [vmem:[%s1805_s1 + $0x80] ss:$8 sps:$4 sm:$0xff]   ;;  %v1358_v55 = vld [vmem:[%s1805_s1 + $0x134] ss:$8 sps:$4 sm:$0xff]  }
  0x13   : > { %746 = vmatpush1.bf16.msra.mxu0 %v1303_v9  ;;  %v231_v40 = vadd.f32 %v227_v31, %v215_v32  ;;  %v232_v41 = vadd.f32 %v223_v30, %v216_v33  ;;  %v233_v42 = vadd.f32 %v227_v31, %v217_v34  ;;  %540 = vmatprep.subr.bf16.mxu1 %v1352_v44  ;;  %v1321_v59 = vld [vmem:[%s1805_s1 + $0x90] ss:$8 sps:$4 sm:$0xff]   ;;  %v1364_v61 = vld [vmem:[%s1805_s1 + $0x144] ss:$8 sps:$4 sm:$0xff]   ;;  %v1366_v63 = vld [vmem:[%s1805_s1 + $0x140] ss:$8 sps:$4 sm:$0xff]  }
  0x14   : > { %747 = vmatprep.subr.bf16.mxu0 %v1304_v10  ;;  %v230_v43 = vadd.f32 %v223_v30, %v214_v37  ;;  %v1322_v62 = vld [vmem:[%s1805_s1 + $0xa4] ss:$8 sps:$4 sm:$0xff]   ;;  %v1370_v0 = vld [vmem:[%s1805_s1 + $0x154] ss:$8 sps:$4 sm:$0xff]   ;;  %v1324_v1 = vld [vmem:[%s1805_s1 + $0xa0] ss:$8 sps:$4 sm:$0xff]  }
  0x15   : > { %v235_v46 = vmax.f32 %v231_v40, 0.0  ;;  %v236_v47 = vmax.f32 %v232_v41, 0.0  ;;  %v237_v48 = vmax.f32 %v233_v42, 0.0  ;;  %v1325_v2 = vld [vmem:[%s1805_s1 + $0xb4] ss:$8 sps:$4 sm:$0xff]  }
  0x16   : > { %v234_v51 = vmax.f32 %v230_v43, 0.0  ;;  %541 = vmatpush1.bf16.msra.mxu1 %v1354_v45  ;;  %v1372_v4 = vld [vmem:[%s1805_s1 + $0x150] ss:$8 sps:$4 sm:$0xff]   ;;  %v1376_v6 = vld [vmem:[%s1805_s1 + $0x164] ss:$8 sps:$4 sm:$0xff]  }
  0x17   : > { %748 = vmatpush1.bf16.msra.mxu0 %v1306_v11  ;;  %v253_v52 = vrot.slane %v235_v46, 7  ;;  %v256_v53 = vrot.slane %v237_v48, 7  ;;  %v254_v54 = vrot.slane %v236_v47, 7  ;;  %542 = vmatprep.subr.bf16.mxu1 %v1358_v55  ;;  %v1327_v7 = vld [vmem:[%s1805_s1 + $0xb0] ss:$8 sps:$4 sm:$0xff]  }
  0x18   : > { %749 = vmatprep.subr.bf16.mxu0 %v1307_v12  ;;  %v252_v56 = vrot.slane %v234_v51, 7  ;;  %v1328_v8 = vld [vmem:[%s1805_s1 + $0xc4] ss:$8 sps:$4 sm:$0xff]   ;;  %v1378_v9 = vld [vmem:[%s1805_s1 + $0x160] ss:$8 sps:$4 sm:$0xff]  }
  0x19   : > { %v1574_v58 = vsel %vm251_vm1, %v253_v52, %v256_v53  ;;  %265 = vst [vmem:[#allocation2 + $0x8] sm:$0xfe] %v253_v52  ;;  %269 = vst [vmem:[#allocation2 + $0x28] sm:$0x1] %v256_v53  ;;  %v1382_v10 = vld [vmem:[%s1805_s1 + $0x174] ss:$8 sps:$4 sm:$0xff]  }
  0x1a   : > { %268 = vst [vmem:[#allocation2 + $0x20] sm:$0x1] %v254_v54  ;;  %v1580_v60 = vsel %vm251_vm1, %v252_v56, %v254_v54  ;;  %264 = vst [vmem:[#allocation2] sm:$0xfe] %v252_v56  ;;  %543 = vmatpush1.bf16.msra.mxu1 %v1360_v57  ;;  %v1330_v11 = vld [vmem:[%s1805_s1 + $0xc0] ss:$8 sps:$4 sm:$0xff]  }
  0x1b   : > { %750 = vmatpush1.bf16.msra.mxu0 %v1309_v14  ;;  %544 = vmatprep.subr.bf16.mxu1 %v1364_v61  ;;  %v1331_v12 = vld [vmem:[%s1805_s1 + $0xd4] ss:$8 sps:$4 sm:$0xff]   ;;  %v1384_v13 = vld [vmem:[%s1805_s1 + $0x170] ss:$8 sps:$4 sm:$0xff]   ;;  %v1388_v14 = vld [vmem:[%s1805_s1 + $0x184] ss:$8 sps:$4 sm:$0xff]  }
  0x1c   : > { %751 = vmatprep.subr.bf16.mxu0 %v1310_v15  ;;  %v1333_v15 = vld [vmem:[%s1805_s1 + $0xd0] ss:$8 sps:$4 sm:$0xff]   ;;  %v1334_v16 = vld [vmem:[%s1805_s1 + $0xe4] ss:$8 sps:$4 sm:$0xff]   ;;  %v1390_v17 = vld [vmem:[%s1805_s1 + $0x180] ss:$8 sps:$4 sm:$0xff]  }
  0x1d   : > { %v1394_v19 = vld [vmem:[%s1805_s1 + $0x194] ss:$8 sps:$4 sm:$0xff]   ;;  %v1396_v23 = vld [vmem:[%s1805_s1 + $0x190] ss:$8 sps:$4 sm:$0xff]   ;;  %v1400_v24 = vld [vmem:[%s1805_s1 + $0x1a4] ss:$8 sps:$4 sm:$0xff]  }
  0x1e   : > { %545 = vmatpush1.bf16.msra.mxu1 %v1366_v63  ;;  %v1337_v21 = vld [vmem:[%s1805_s1 + $0xf4] ss:$8 sps:$4 sm:$0xff]   ;;  %v1341_v25 = vld [vmem:[%s1805_s1 + $0xf0] ss:$8 sps:$4 sm:$0xff]   ;;  %v1345_v27 = vld [vmem:[%s1805_s1 + $0x204] ss:$8 sps:$4 sm:$0xff]  }
  0x1f   : > { %752 = vmatpush1.bf16.msra.mxu0 %v1312_v18  ;;  %546 = vmatprep.subr.bf16.mxu1 %v1370_v0  ;;  %v1406_v32 = vld [vmem:[%s1805_s1 + $0x1b4] ss:$8 sps:$4 sm:$0xff]   ;;  %v1343_v33 = vld [vmem:[%s1805_s1 + $0x200] ss:$8 sps:$4 sm:$0xff]   ;;  %v1408_v37 = vld [vmem:[%s1805_s1 + $0x1b0] ss:$8 sps:$4 sm:$0xff]  }
  0x20   : > { %753 = vmatprep.subr.bf16.mxu0 %v1313_v20  ;;  %v271_v3 = vld [vmem:[#allocation2 + $0x8] sm:$0xff]  ;;  %v1351_v34 = vld [vmem:[%s1805_s1 + $0x214] ss:$8 sps:$4 sm:$0xff]   ;;  %v1349_v42 = vld [vmem:[%s1805_s1 + $0x210] ss:$8 sps:$4 sm:$0xff]  }
  0x21   : > { %v275_v5 = vpack.c.bf16 %v1574_v58, %v271_v3  ;;  %v309_v18 = vld [vmem:[#allocation2 + $0x8] sm:$0xfe]  ;;  %v270_v26 = vld [vmem:[#allocation2] sm:$0xff]  ;;  %v311_v41 = vld [vmem:[#allocation2 + $0x28] sm:$0x1] }
  0x22   : > { %547 = vmatpush1.bf16.msra.mxu1 %v1372_v4  ;;  %v1336_v20 = vld [vmem:[%s1805_s1 + $0xe0] ss:$8 sps:$4 sm:$0xff]   ;;  %v313_v22 = vpack.c.bf16 %v1574_v58, %v309_v18  ;;  %v274_v31 = vpack.c.bf16 %v1580_v60, %v270_v26  ;;  %v1412_v40 = vld [vmem:[%s1805_s1 + $0x1c4] ss:$8 sps:$4 sm:$0xff]   ;;  %v315_v43 = vpack.c.bf16 %v311_v41, %v311_v41  ;;  %v1418_v52 = vld [vmem:[%s1805_s1 + $0x1d4] ss:$8 sps:$4 sm:$0xff]  }
  0x23   : > { %754 = vmatpush1.bf16.msra.mxu0 %v1315_v29  ;;  %771 = vmatprep.mubr.bf16.mxu0 %v275_v5  ;;  %v1402_v29 = vld [vmem:[%s1805_s1 + $0x1a0] ss:$8 sps:$4 sm:$0xff]   ;;  %v1357_v45 = vld [vmem:[%s1805_s1 + $0x224] ss:$8 sps:$4 sm:$0xff]   ;;  %v1363_v57 = vld [vmem:[%s1805_s1 + $0x234] ss:$8 sps:$4 sm:$0xff]  }
  0x24   : > { %755 = vmatprep.subr.bf16.mxu0 %v1316_v39  ;;  %548 = vmatprep.subr.bf16.mxu1 %v1376_v6  ;;  %v365_v28 = vshll.u32 %v313_v22, 16  ;;  %v783_v30 = vld [vmem:[#allocation2 + $0x8] sm:$0xfc]  ;;  %v308_v35 = vld [vmem:[#allocation2] sm:$0xfe]  ;;  %v363_v38 = vshrl.u32 %v313_v22, 16 }
  0x25   : > { %v787_v36 = vpack.c.bf16 %v1574_v58, %v783_v30  ;;  %v312_v44 = vpack.c.bf16 %v1580_v60, %v308_v35  ;;  %v785_v46 = vld [vmem:[#allocation2 + $0x28] sm:$0x3]  ;;  %v310_v53 = vld [vmem:[#allocation2 + $0x20] sm:$0x1]  ;;  %v1420_v58 = vld [vmem:[%s1805_s1 + $0x1d0] ss:$8 sps:$4 sm:$0xff]  }
  0x26   : > { %549 = vmatpush1.bf16.msra.mxu1 %v1378_v9  ;;  %v367_v39 = vrot.slane %v365_v28, 1  ;;  %v1414_v48 = vld [vmem:[%s1805_s1 + $0x1c0] ss:$8 sps:$4 sm:$0xff]   ;;  %v789_v51 = vpack.c.bf16 %v785_v46, %v785_v46  ;;  %v314_v61 = vpack.c.bf16 %v310_v53, %v310_v53  ;;  %v1424_v0 = vld [vmem:[%s1805_s1 + $0x1e4] ss:$8 sps:$4 sm:$0xff]  }
  0x27   : > { %756 = vmatpush1.bf16.msra.mxu0 %v1318_v49  ;;  %550 = vmatprep.subr.bf16.mxu1 %v1382_v10  ;;  %v831_v47 = vrot.slane %v787_v36, 1  ;;  %v1355_v54 = vld [vmem:[%s1805_s1 + $0x220] ss:$8 sps:$4 sm:$0xff]   ;;  %v351_v4 = vshrl.u32 %v312_v44, 16  ;;  %v1375_v9 = vld [vmem:[%s1805_s1 + $0x254] ss:$8 sps:$4 sm:$0xff]  }
  0x28   : > { %757 = vmatprep.subr.bf16.mxu0 %v1319_v50  ;;  %v368_v49 = vor.u32 %v367_v39, %v363_v38  ;;  %v370_v50 = vshll.u32 %v315_v43, 16  ;;  %v832_v56 = vrot.slane %v789_v51, 1  ;;  %v1426_v3 = vld [vmem:[%s1805_s1 + $0x1e0] ss:$8 sps:$4 sm:$0xff]   ;;  %v358_v6 = vshll.u32 %v314_v61, 16 }
  0x29   : > { %v1432_v10 = vld [vmem:[%s1805_s1 + $0x1f0] ss:$8 sps:$4 sm:$0xff]   ;;  %v1415_v28 = vld [vmem:[%s1805_s1 + $0x2c0] ss:$8 sps:$4 sm:$0xff]  }
  0x2a   : > { %551 = vmatpush1.bf16.msra.mxu1 %v1384_v13  ;;  %v372_v55 = vrot.slane %v370_v50, 1  ;;  %v833_v63 = vsel %vm827_vm2, %v831_v47, %v832_v56  ;;  %v1373_v13 = vld [vmem:[%s1805_s1 + $0x250] ss:$8 sps:$4 sm:$0xff]  }
  0x2b   : > { %758 = vmatpush1.bf16.msra.mxu0 %v1321_v59  ;;  %552 = vmatprep.subr.bf16.mxu1 %v1388_v14  ;;  %v1381_v14 = vld [vmem:[%s1805_s1 + $0x264] ss:$8 sps:$4 sm:$0xff]   ;;  %v1385_v18 = vld [vmem:[%s1805_s1 + $0x270] ss:$8 sps:$4 sm:$0xff]  }
  0x2c   : > { %759 = vmatprep.subr.bf16.mxu0 %v1322_v62  ;;  %v373_v59 = vsel %vm349_vm3, %v368_v49, %v372_v55  ;;  %v353_v62 = vshll.u32 %v312_v44, 16  ;;  %v1397_v22 = vld [vmem:[%s1805_s1 + $0x290] ss:$8 sps:$4 sm:$0xff]  }
  0x2d   : > { %568 = vmatprep.mubr.bf16.mxu1 %v373_v59  ;;  %v1409_v26 = vld [vmem:[%s1805_s1 + $0x2b0] ss:$8 sps:$4 sm:$0xff]  }
  0x2e   : > { %553 = vmatpush1.bf16.msra.mxu1 %v1390_v17  ;;  %v355_v5 = vrot.slane %v353_v62, 1  ;;  %v1387_v17 = vld [vmem:[%s1805_s1 + $0x274] ss:$8 sps:$4 sm:$0xff]   ;;  %v1421_v30 = vld [vmem:[%s1805_s1 + $0x2d0] ss:$8 sps:$4 sm:$0xff]  }
  0x2f   : > { %760 = vmatpush1.bf16.msra.mxu0 %v1324_v1  ;;  %554 = vmatprep.subr.bf16.mxu1 %v1394_v19  ;;  %v1361_v1 = vld [vmem:[%s1805_s1 + $0x230] ss:$8 sps:$4 sm:$0xff]   ;;  %v1393_v19 = vld [vmem:[%s1805_s1 + $0x284] ss:$8 sps:$4 sm:$0xff]  }
  0x30   : > { %761 = vmatprep.subr.bf16.mxu0 %v1325_v2  ;;  %v1369_v2 = vld [vmem:[%s1805_s1 + $0x244] ss:$8 sps:$4 sm:$0xff]   ;;  %v1433_v38 = vld [vmem:[%s1805_s1 + $0x2f0] ss:$8 sps:$4 sm:$0xff]  }
  0x32   : > { %555 = vmatpush1.bf16.msra.mxu1 %v1396_v23  ;;  %v1405_v23 = vld [vmem:[%s1805_s1 + $0x2a4] ss:$8 sps:$4 sm:$0xff]  }
  0x33   : > { %762 = vmatpush1.bf16.msra.mxu0 %v1327_v7  ;;  %556 = vmatprep.subr.bf16.mxu1 %v1400_v24  ;;  %v1430_v7 = vld [vmem:[%s1805_s1 + $0x1f4] ss:$8 sps:$4 sm:$0xff]   ;;  %v1403_v24 = vld [vmem:[%s1805_s1 + $0x2a0] ss:$8 sps:$4 sm:$0xff]  }
  0x34   : > { %763 = vmatprep.subr.bf16.mxu0 %v1328_v8  ;;  %v1367_v8 = vld [vmem:[%s1805_s1 + $0x240] ss:$8 sps:$4 sm:$0xff]  }
  0x36   : > { %557 = vmatpush1.bf16.msra.mxu1 %v1402_v29  ;;  %v1423_v29 = vld [vmem:[%s1805_s1 + $0x2d4] ss:$8 sps:$4 sm:$0xff]  }
  0x37   : > { %764 = vmatpush1.bf16.msra.mxu0 %v1330_v11  ;;  %558 = vmatprep.subr.bf16.mxu1 %v1406_v32  ;;  %v356_v11 = vor.u32 %v355_v5, %v351_v4  ;;  %v782_v32 = vld [vmem:[#allocation2] sm:$0xfc] }
  0x38   : > { %765 = vmatprep.subr.bf16.mxu0 %v1331_v12  ;;  %v360_v12 = vrot.slane %v358_v6, 1  ;;  %v786_v35 = vpack.c.bf16 %v1580_v60, %v782_v32 }
  0x3a   : > { %559 = vmatpush1.bf16.msra.mxu1 %v1408_v37  ;;  %v1435_v37 = vld [vmem:[%s1805_s1 + $0x2f4] ss:$8 sps:$4 sm:$0xff]   ;;  %v828_v39 = vrot.slane %v786_v35, 1 }
  0x3b   : > { %766 = vmatpush1.bf16.msra.mxu0 %v1333_v15  ;;  %560 = vmatprep.subr.bf16.mxu1 %v1412_v40  ;;  %v361_v15 = vsel %vm349_vm3, %v356_v11, %v360_v12 }
  0x3c   : > { %767 = vmatprep.subr.bf16.mxu0 %v1334_v16  ;;  %v1379_v16 = vld [vmem:[%s1805_s1 + $0x260] ss:$8 sps:$4 sm:$0xff]  }
  0x3e   : > { %561 = vmatpush1.bf16.msra.mxu1 %v1414_v48 }
  0x3f   : > { %768 = vmatpush1.bf16.msra.mxu0 %v1336_v20  ;;  %562 = vmatprep.subr.bf16.mxu1 %v1418_v52  ;;  %v1391_v20 = vld [vmem:[%s1805_s1 + $0x280] ss:$8 sps:$4 sm:$0xff]  }
  0x40   : > { %769 = vmatprep.subr.bf16.mxu0 %v1337_v21  ;;  %v1399_v21 = vld [vmem:[%s1805_s1 + $0x294] ss:$8 sps:$4 sm:$0xff]  }
  0x42   : > { %563 = vmatpush1.bf16.msra.mxu1 %v1420_v58 }
  0x43   : > { %770 = vmatpush1.bf16.msra.mxu0 %v1341_v25  ;;  %564 = vmatprep.subr.bf16.mxu1 %v1424_v0  ;;  %v1411_v25 = vld [vmem:[%s1805_s1 + $0x2b4] ss:$8 sps:$4 sm:$0xff]  }
  0x44   : > { %996 = vmatprep.subr.bf16.mxu0 %v1345_v27  ;;  %v1417_v27 = vld [vmem:[%s1805_s1 + $0x2c4] ss:$8 sps:$4 sm:$0xff]  }
  0x46   : > { %772 = vmatmul.mubr.bf16.vlgmr.msra.gmra.mrb[0].mxu0 %v274_v31  ;;  %565 = vmatpush1.bf16.msra.mxu1 %v1426_v3  ;;  %v1429_v31 = vld [vmem:[%s1805_s1 + $0x2e4] ss:$8 sps:$4 sm:$0xff]  }
  0x47   : > { %997 = vmatpush1.bf16.msra.mxu0 %v1343_v33  ;;  %1028 = vmatprep.mubr.bf16.mxu0 %v833_v63  ;;  %v784_v33 = vld [vmem:[#allocation2 + $0x20] sm:$0x3] }
  0x48   : > { %998 = vmatprep.subr.bf16.mxu0 %v1351_v34  ;;  %566 = vmatprep.subr.bf16.mxu1 %v1430_v7  ;;  %v1427_v34 = vld [vmem:[%s1805_s1 + $0x2e0] ss:$8 sps:$4 sm:$0xff]   ;;  %v788_v36 = vpack.c.bf16 %v784_v33, %v784_v33 }
  0x4a   : > { %567 = vmatpush1.bf16.msra.mxu1 %v1432_v10  ;;  %v829_v40 = vrot.slane %v788_v36, 1 }
  0x4b   : > { %999 = vmatpush1.bf16.msra.mxu0 %v1349_v42 }
  0x4c   : > { %1000 = vmatprep.subr.bf16.mxu0 %v1357_v45  ;;  %v830_v41 = vsel %vm827_vm2, %v828_v39, %v829_v40 }
  0x4d   : > { %569 = vmatmul.mubr.bf16.vlgmr.msra.gmra.mrb[0].mxu1 %v361_v15 }
  0x4f   : > { %1001 = vmatpush1.bf16.msra.mxu0 %v1355_v54 }
  0x50   : > { %1002 = vmatprep.subr.bf16.mxu0 %v1363_v57 }
  0x53   : > { %1003 = vmatpush1.bf16.msra.mxu0 %v1361_v1 }
  0x54   : > { %1004 = vmatprep.subr.bf16.mxu0 %v1369_v2 }
  0x57   : > { %1005 = vmatpush1.bf16.msra.mxu0 %v1367_v8 }
  0x58   : > { %1006 = vmatprep.subr.bf16.mxu0 %v1375_v9 }
  0x5b   : > { %1007 = vmatpush1.bf16.msra.mxu0 %v1373_v13 }
  0x5c   : > { %1008 = vmatprep.subr.bf16.mxu0 %v1381_v14 }
  0x5f   : > { %1009 = vmatpush1.bf16.msra.mxu0 %v1379_v16 }
  0x60   : > { %1010 = vmatprep.subr.bf16.mxu0 %v1387_v17 }
  0x63   : > { %1011 = vmatpush1.bf16.msra.mxu0 %v1385_v18 }
  0x64   : > { %1012 = vmatprep.subr.bf16.mxu0 %v1393_v19 }
  0x67   : > { %1013 = vmatpush1.bf16.msra.mxu0 %v1391_v20 }
  0x68   : > { %1014 = vmatprep.subr.bf16.mxu0 %v1399_v21 }
  0x6b   : > { %1015 = vmatpush1.bf16.msra.mxu0 %v1397_v22 }
  0x6c   : > { %1016 = vmatprep.subr.bf16.mxu0 %v1405_v23 }
  0x6f   : > { %1017 = vmatpush1.bf16.msra.mxu0 %v1403_v24 }
  0x70   : > { %1018 = vmatprep.subr.bf16.mxu0 %v1411_v25 }
  0x73   : > { %1019 = vmatpush1.bf16.msra.mxu0 %v1409_v26 }
  0x74   : > { %1020 = vmatprep.subr.bf16.mxu0 %v1417_v27 }
  0x77   : > { %1021 = vmatpush1.bf16.msra.mxu0 %v1415_v28 }
  0x78   : > { %1022 = vmatprep.subr.bf16.mxu0 %v1423_v29 }
  0x7b   : > { %1023 = vmatpush1.bf16.msra.mxu0 %v1421_v30 }
  0x7c   : > { %1024 = vmatprep.subr.bf16.mxu0 %v1429_v31 }
  0x7f   : > { %1025 = vmatpush1.bf16.msra.mxu0 %v1427_v34 }
  0x80   : > { %1026 = vmatprep.subr.bf16.mxu0 %v1435_v37 }
  0x83   : > { %1027 = vmatpush1.bf16.msra.mxu0 %v1433_v38 }
  0x86   : > { %1029 = vmatmul.mubr.bf16.vlgmr.msra.gmra.mrb[0].mxu0 %v830_v41 }
 0x120   : > { %v570_v60 = vpop.f32.mrb[0].mxu1 }
 0x121   : > { %v572_v42 = vpop.f32.mrb[1].mxu1 }
 0x122   : > { %v574_v43 = vpop.f32.mrb[2].mxu1 }
 0x123   : > { %v576_v44 = vpop.f32.mrb[3].mxu1 }
 0x159   : > { %v1030_v45 = vpop.f32.mrb[0].mxu0 }
 0x15a   : > { %v1275_v46 = vadd.f32 %v1030_v45, %v570_v60  ;;  %v1032_v47 = vpop.f32.mrb[1].mxu0 }
 0x15b   : > { %v1276_v48 = vadd.f32 %v1032_v47, %v572_v42  ;;  %v1034_v49 = vpop.f32.mrb[2].mxu0 }
 0x15c   : > { %1043 = vst [vmem:[%s197_s8] sm:$0xff] %v1275_v46  ;;  %v1277_v50 = vadd.f32 %v1034_v49, %v574_v43  ;;  %v1036_v51 = vpop.f32.mrb[3].mxu0 }
 0x15d   : > { %1044 = vst [vmem:[%s197_s8 + $0x8] sm:$0xff] %v1276_v48  ;;  %v1278_v52 = vadd.f32 %v1036_v51, %v576_v44 }
 0x15e   : > { %1045 = vst [vmem:[%s197_s8 + $0x10] sm:$0xff] %v1277_v50 }
 0x15f   : > { %1046 = vst [vmem:[%s197_s8 + $0x18] sm:$0xff] %v1278_v52 }
 0x160 PF: > { %s14_s15 = sadd.s32 1, %s1442_s15  }
 0x161   : > { %p11_p4 = scmp.ge.s32.totalorder %s14_s15, 4  }
 0x163   :  { %13 = sbr.rel (!%p11_p4) target bundleno = 1 (0x1), region = 69 }

</bundles_post_ra>
